<compile_context>
chip_gen: v7x
topology: tpu7x:2x2x1
jax: 0.10.0
libtpu: 0.0.40
codegen_flags: <defaults>
</compile_context>

<pallas_src>
import math
import numpy as np
import jax
import jax.numpy as jnp
from jax import lax
from jax.experimental import pallas as pl
from jax.experimental.pallas import tpu as pltpu

EPS = 1e-8  # matches TorsionAngles(eps=1e-08)


def _round_up(x, m):
    return ((x + m - 1) // m) * m


def _torsion_kernel(s_ref, w1_ref, wfs_ref, b1_ref, bfp_ref, u_ref, n_ref):
    # s_ref:  (TM, c) input rows (original dtype).
    # w1_ref: (c, c)  MXU dtype (bf16).
    # wfs_ref:(2, c, d) MXU dtype; [0] = Wf, [1] = W2 @ Wf.
    # b1_ref: (1, c)  f32.   bfp_ref: (1, d) f32 (= b2 @ Wf + bf).
    # u_ref / n_ref: (TM, d) output tiles (unnormalized / normalized).
    s_mx = s_ref[...].astype(w1_ref.dtype)   # single cast of the big slab; feeds MXU

    # linear_1 + ReLU (f32 accumulation on the MXU).
    h = jnp.dot(s_mx, w1_ref[...], preferred_element_type=jnp.float32)
    h = jnp.maximum(h + b1_ref[...], 0.0)

    # linear_2 folded into linear_final:
    #   u = relu(s@W1 + b1) @ (W2 Wf) + s @ Wf + (b2 Wf + bf)
    u = jnp.dot(h.astype(w1_ref.dtype), wfs_ref[1],
                preferred_element_type=jnp.float32)
    u = u + jnp.dot(s_mx, wfs_ref[0], preferred_element_type=jnp.float32)
    u = u + bfp_ref[...]

    # L2 normalization over the torsion axis: rsqrt -> EUP slot, mul -> VPU.
    ssq = jnp.sum(u * u, axis=-1, keepdims=True)
    inv = lax.rsqrt(jnp.maximum(ssq, EPS))

    u_ref[...] = u.astype(u_ref.dtype)
    n_ref[...] = (u * inv).astype(n_ref.dtype)


def torsion_angles(s, params, *, tm=2048, mxu_dtype=jnp.bfloat16):
    """s: array [..., c]. Returns (unnormalized, normalized), each [..., 2*num_torsions]."""
    c = s.shape[-1]
    d = params["wf"].shape[-1]
    lead = s.shape[:-1]
    n = int(np.prod(lead)) if lead else 1
    s2d = s.reshape(n, c)

    # Row tiling: 8-aligned, large (amortize per-step overhead), never larger
    # than the padded row count, and capped so the grid keeps >= 2 steps when
    # possible (v7x has 2 TensorCores; 'parallel' only helps with >= 2 steps).
    tm = max(8, (int(tm) // 8) * 8)
    n8 = _round_up(n, 8)
    tm = min(tm, n8)
    if n8 > 8:
        tm = min(tm, _round_up((n8 + 1) // 2, 8))
    n_pad = _round_up(n, tm)
    if n_pad != n:
        s2d = jnp.pad(s2d, ((0, n_pad - n), (0, 0)))

    # Parameter packing + algebraic fold, done once in the wrapper in f32, then
    # cast to the MXU dtype. Weights are stored (in, out) so the kernel does x @ W.
    w1 = params["w1"].astype(jnp.float32)
    w2 = params["w2"].astype(jnp.float32)
    wf = params["wf"].astype(jnp.float32)
    w1_mx = w1.astype(mxu_dtype)                                    # (c, c)
    wfs_mx = jnp.stack([wf, w2 @ wf]).astype(mxu_dtype)             # (2, c, d)
    b1 = params["b1"].astype(jnp.float32)[None, :]                  # (1, c)
    bfp = (params["b2"].astype(jnp.float32) @ wf
           + params["bf"].astype(jnp.float32))[None, :]             # (1, d)

    out_dt = s.dtype
    # Advisory cost estimate using the real element sizes.
    flops = int(2 * n_pad * c * (c + 2 * d))
    bytes_accessed = int(
        n_pad * c * jnp.dtype(s.dtype).itemsize
        + 2 * n_pad * d * jnp.dtype(out_dt).itemsize
        + (c * c + 2 * c * d) * jnp.dtype(mxu_dtype).itemsize
        + (c + d) * 4)
    cost = pl.CostEstimate(flops=flops, transcendentals=int(n_pad),
                           bytes_accessed=bytes_accessed)

    unnorm, norm = pl.pallas_call(
        _torsion_kernel,
        out_shape=(jax.ShapeDtypeStruct((n_pad, d), out_dt),
                   jax.ShapeDtypeStruct((n_pad, d), out_dt)),
        grid_spec=pltpu.PrefetchScalarGridSpec(
            num_scalar_prefetch=0,
            grid=(n_pad // tm,),
            in_specs=[
                pl.BlockSpec((tm, c), lambda i: (i, 0)),        # s rows
                pl.BlockSpec((c, c), lambda i: (0, 0)),         # W1 (bf16)
                pl.BlockSpec((2, c, d), lambda i: (0, 0, 0)),   # [Wf, W2@Wf]
                pl.BlockSpec((1, c), lambda i: (0, 0)),         # b1
                pl.BlockSpec((1, d), lambda i: (0, 0)),         # b2@Wf + bf
            ],
            out_specs=[
                pl.BlockSpec((tm, d), lambda i: (i, 0)),
                pl.BlockSpec((tm, d), lambda i: (i, 0)),
            ],
        ),
        compiler_params=pltpu.CompilerParams(
            dimension_semantics=("parallel",)),
        cost_estimate=cost,
    )(s2d, w1_mx, wfs_mx, b1, bfp)

    unnorm = unnorm[:n].reshape(*lead, d)
    norm = norm[:n].reshape(*lead, d)
    return unnorm, norm


def init_params(c, num_torsions, key):
    """Parameter shapes mirroring the module.

    linear_1 / linear_2: 'relu' (He) init (plain normal stand-in for the
    truncated normal), bias = 0. linear_final: the module uses 'final'
    (all-zero) init, but small random values are used here so the test
    exercises the normalization path instead of producing all zeros.
    Weights are stored pre-transposed as (in, out) so the kernel does x @ W.
    """
    k1, k2, k3 = jax.random.split(key, 3)
    d = num_torsions * 2
    std_relu = math.sqrt(2.0 / c)
    std_final = math.sqrt(1.0 / c)
    return {
        "w1": std_relu * jax.random.normal(k1, (c, c), dtype=jnp.float32),
        "b1": jnp.zeros((c,), dtype=jnp.float32),
        "w2": std_relu * jax.random.normal(k2, (c, c), dtype=jnp.float32),
        "b2": jnp.zeros((c,), dtype=jnp.float32),
        "wf": std_final * jax.random.normal(k3, (c, d), dtype=jnp.float32),
        "bf": jnp.zeros((d,), dtype=jnp.float32),
    }


def _reference(s, p):
    # Pure-JAX f32 reference of the PyTorch forward pass.
    s0 = s
    h = jnp.maximum(s @ p["w1"] + p["b1"], 0.0)
    h = h @ p["w2"] + p["b2"]
    x = h + s0
    u = x @ p["wf"] + p["bf"]
    denom = jnp.sqrt(jnp.maximum(jnp.sum(u * u, axis=-1, keepdims=True), EPS))
    return u, u / denom


if __name__ == "__main__":
    c = 32
    num_torsions = 7
    batch, seq = 2, 8

    key = jax.random.PRNGKey(0)
    k_s, k_p = jax.random.split(key)

    s = jax.random.normal(k_s, (batch, seq, c), dtype=jnp.float32)
    params = init_params(c, num_torsions, k_p)

    u, nrm = torsion_angles(s, params)
    u, nrm = jax.block_until_ready((u, nrm))

    ref_u, ref_n = _reference(s, params)
    # Tolerances loosened vs. the pure-f32 version: MXU operands are bf16
    # (accumulation stays f32), so per-element drift is O(1e-2) at these scales.
    np.testing.assert_allclose(np.asarray(u), np.asarray(ref_u),
                               rtol=5e-2, atol=5e-2)
    np.testing.assert_allclose(np.asarray(nrm), np.asarray(ref_n),
                               rtol=5e-2, atol=5e-2)
    print("KERNEL_OK")
</pallas_src>

<mosaic_0001>
module attributes {stable_mosaic.version = 11 : i64} {
  func.func @_torsion_kernel(%arg0: i32, %arg1: memref<8x32xf32, #tpu.memory_space<vmem>>, %arg2: memref<32x32xbf16, #tpu.memory_space<vmem>>, %arg3: memref<2x32x14xbf16, #tpu.memory_space<vmem>>, %arg4: memref<1x32xf32, #tpu.memory_space<vmem>>, %arg5: memref<1x14xf32, #tpu.memory_space<vmem>>, %arg6: memref<8x14xf32, #tpu.memory_space<vmem>>, %arg7: memref<8x14xf32, #tpu.memory_space<vmem>>) attributes {dimension_semantics = [#tpu.dimension_semantics<parallel>], iteration_bounds = array<i64: 2>, scalar_prefetch = 0 : i64, scratch_operands = 0 : i64, tpu.core_type = #tpu.core_type<tc>, window_params = [{transform_indices = @transform_0, window_bounds = array<i64: 8, 32>}, {pipeline_mode = #tpu.pipeline_mode<synchronous>, transform_indices = @transform_1, window_bounds = array<i64: 32, 32>}, {pipeline_mode = #tpu.pipeline_mode<synchronous>, transform_indices = @transform_2, window_bounds = array<i64: 2, 32, 14>}, {pipeline_mode = #tpu.pipeline_mode<synchronous>, transform_indices = @transform_3, window_bounds = array<i64: 1, 32>}, {pipeline_mode = #tpu.pipeline_mode<synchronous>, transform_indices = @transform_4, window_bounds = array<i64: 1, 14>}, {transform_indices = @transform_5, window_bounds = array<i64: 8, 14>}, {transform_indices = @transform_6, window_bounds = array<i64: 8, 14>}]} {
    %c0 = arith.constant 0 : index
    %c0_0 = arith.constant 0 : index
    %0 = vector.load %arg1[%c0, %c0_0] : memref<8x32xf32, #tpu.memory_space<vmem>>, vector<8x32xf32>
    %1 = arith.truncf %0 : vector<8x32xf32> to vector<8x32xbf16>
    %c0_1 = arith.constant 0 : index
    %c0_2 = arith.constant 0 : index
    %2 = vector.load %arg2[%c0_1, %c0_2] : memref<32x32xbf16, #tpu.memory_space<vmem>>, vector<32x32xbf16>
    %cst = arith.constant dense<0.000000e+00> : vector<8x32xf32>
    %3 = tpu.matmul %1, %2, %cst {dimension_numbers = #tpu.dot_dimension_numbers<[1], [0], [0], [1], [0, 0, 1, 1], [], []>} : vector<8x32xbf16>, vector<32x32xbf16>, vector<8x32xf32> -> vector<8x32xf32>
    %c0_3 = arith.constant 0 : index
    %c0_4 = arith.constant 0 : index
    %4 = vector.load %arg4[%c0_3, %c0_4] : memref<1x32xf32, #tpu.memory_space<vmem>>, vector<1x32xf32>
    %5 = vector.broadcast %4 : vector<1x32xf32> to vector<8x32xf32>
    %6 = arith.addf %3, %5 : vector<8x32xf32>
    %cst_5 = arith.constant 0.000000e+00 : f32
    %7 = vector.broadcast %cst_5 : f32 to vector<8x32xf32>
    %8 = arith.maximumf %6, %7 : vector<8x32xf32>
    %9 = arith.truncf %8 : vector<8x32xf32> to vector<8x32xbf16>
    %c1 = arith.constant 1 : index
    %c0_6 = arith.constant 0 : index
    %c0_7 = arith.constant 0 : index
    %10 = vector.load %arg3[%c1, %c0_6, %c0_7] : memref<2x32x14xbf16, #tpu.memory_space<vmem>>, vector<1x32x14xbf16>
    %11 = vector.shape_cast %10 : vector<1x32x14xbf16> to vector<32x14xbf16>
    %cst_8 = arith.constant dense<0.000000e+00> : vector<8x14xf32>
    %12 = tpu.matmul %9, %11, %cst_8 {dimension_numbers = #tpu.dot_dimension_numbers<[1], [0], [0], [1], [0, 0, 1, 1], [], []>} : vector<8x32xbf16>, vector<32x14xbf16>, vector<8x14xf32> -> vector<8x14xf32>
    %c0_9 = arith.constant 0 : index
    %c0_10 = arith.constant 0 : index
    %c0_11 = arith.constant 0 : index
    %13 = vector.load %arg3[%c0_9, %c0_10, %c0_11] : memref<2x32x14xbf16, #tpu.memory_space<vmem>>, vector<1x32x14xbf16>
    %14 = vector.shape_cast %13 : vector<1x32x14xbf16> to vector<32x14xbf16>
    %cst_12 = arith.constant dense<0.000000e+00> : vector<8x14xf32>
    %15 = tpu.matmul %1, %14, %cst_12 {dimension_numbers = #tpu.dot_dimension_numbers<[1], [0], [0], [1], [0, 0, 1, 1], [], []>} : vector<8x32xbf16>, vector<32x14xbf16>, vector<8x14xf32> -> vector<8x14xf32>
    %16 = arith.addf %12, %15 : vector<8x14xf32>
    %c0_13 = arith.constant 0 : index
    %c0_14 = arith.constant 0 : index
    %17 = vector.load %arg5[%c0_13, %c0_14] : memref<1x14xf32, #tpu.memory_space<vmem>>, vector<1x14xf32>
    %18 = vector.broadcast %17 : vector<1x14xf32> to vector<8x14xf32>
    %19 = arith.addf %16, %18 : vector<8x14xf32>
    %20 = arith.mulf %19, %19 : vector<8x14xf32>
    %cst_15 = arith.constant dense<0.000000e+00> : vector<8xf32>
    %21 = vector.multi_reduction <add>, %20, %cst_15 [1] : vector<8x14xf32> to vector<8xf32>
    %22 = vector.shape_cast %21 : vector<8xf32> to vector<8x1xf32>
    %cst_16 = arith.constant 9.99999993E-9 : f32
    %23 = vector.broadcast %cst_16 : f32 to vector<8x1xf32>
    %24 = arith.maximumf %22, %23 : vector<8x1xf32>
    %25 = math.rsqrt %24 : vector<8x1xf32>
    %c0_17 = arith.constant 0 : index
    %c0_18 = arith.constant 0 : index
    %26 = vector.load %arg6[%c0_17, %c0_18] : memref<8x14xf32, #tpu.memory_space<vmem>>, vector<8x14xf32>
    tpu.vector_store %arg6[%c0_17, %c0_18], %19 {strides = array<i32>} : memref<8x14xf32, #tpu.memory_space<vmem>>, vector<8x14xf32>,
    %27 = vector.broadcast %25 : vector<8x1xf32> to vector<8x14xf32>
    %28 = arith.mulf %19, %27 : vector<8x14xf32>
    %c0_19 = arith.constant 0 : index
    %c0_20 = arith.constant 0 : index
    %29 = vector.load %arg7[%c0_19, %c0_20] : memref<8x14xf32, #tpu.memory_space<vmem>>, vector<8x14xf32>
    tpu.vector_store %arg7[%c0_19, %c0_20], %28 {strides = array<i32>} : memref<8x14xf32, #tpu.memory_space<vmem>>, vector<8x14xf32>,
    return
  }
  func.func @transform_0(%arg0: i32) -> (i32, i32) {
    %c0_i32 = arith.constant 0 : i32
    %c0_i32_0 = arith.constant 0 : i32
    return %arg0, %c0_i32 : i32, i32
  }
  func.func @transform_1(%arg0: i32) -> (i32, i32) {
    %c0_i32 = arith.constant 0 : i32
    %c0_i32_0 = arith.constant 0 : i32
    %c0_i32_1 = arith.constant 0 : i32
    return %c0_i32, %c0_i32_0 : i32, i32
  }
  func.func @transform_2(%arg0: i32) -> (i32, i32, i32) {
    %c0_i32 = arith.constant 0 : i32
    %c0_i32_0 = arith.constant 0 : i32
    %c0_i32_1 = arith.constant 0 : i32
    %c0_i32_2 = arith.constant 0 : i32
    return %c0_i32, %c0_i32_0, %c0_i32_1 : i32, i32, i32
  }
  func.func @transform_3(%arg0: i32) -> (i32, i32) {
    %c0_i32 = arith.constant 0 : i32
    %c0_i32_0 = arith.constant 0 : i32
    %c0_i32_1 = arith.constant 0 : i32
    return %c0_i32, %c0_i32_0 : i32, i32
  }
  func.func @transform_4(%arg0: i32) -> (i32, i32) {
    %c0_i32 = arith.constant 0 : i32
    %c0_i32_0 = arith.constant 0 : i32
    %c0_i32_1 = arith.constant 0 : i32
    return %c0_i32, %c0_i32_0 : i32, i32
  }
  func.func @transform_5(%arg0: i32) -> (i32, i32) {
    %c0_i32 = arith.constant 0 : i32
    %c0_i32_0 = arith.constant 0 : i32
    return %arg0, %c0_i32 : i32, i32
  }
  func.func @transform_6(%arg0: i32) -> (i32, i32) {
    %c0_i32 = arith.constant 0 : i32
    %c0_i32_0 = arith.constant 0 : i32
    return %arg0, %c0_i32 : i32, i32
  }
}

</mosaic_0001>

<bundles_post_ra>
// kernel: tpu_custom_call.1
= control target key start
LH: loop header
LB: loop body
LE: loop exit
PB: predicated region body
PF: predicated region fallthrough
CT: control target
= control target key end

     0   :  { %12 = vsyncpa [#allocation3], 0  ;;  %s1005_s0 = inlined_call_operand.vmem [shape: f32[16,32], index: 0, kind: input, shape index: {}]   ;;  %s1006_s1 = inlined_call_operand.vmem [shape: bf16[32,32], index: 1, kind: input, shape index: {}]   ;;  %s1007_s2 = inlined_call_operand.vmem [shape: bf16[2,32,14], index: 2, kind: input, shape index: {}]   ;;  %s1008_s3 = inlined_call_operand.vmem [shape: f32[1,32], index: 3, kind: input, shape index: {}]   ;;  %s1009_s4 = inlined_call_operand.vmem [shape: f32[1,14], index: 4, kind: input, shape index: {}]   ;;  %s1010_s5 = inlined_call_operand.hbm [shape: f32[16,14], index: 5, kind: output, shape index: {0}]   ;;  %s1011_s6 = inlined_call_operand.hbm [shape: f32[16,14], index: 6, kind: output, shape index: {1}]  }
   0x1   :  { %14 = vsyncpa [#allocation3 + $0x1], 0 }
   0x2   :  { %15 = vsyncpa [#allocation5], 0 }
   0x3   :  { %17 = vsyncpa [#allocation5 + $0x1], 0  ;;  %s837_s21 = smov 0   ;;  %s839_s22 = smov 0  }
   0x4   :  { %s841_s23 = smov 0   ;;  %s843_s24 = smov 0  }
   0x5 LB: > { %s858_s25 = sadd.s32 4294967295, %s796_s24   ;;  %s587_s26 = sadd.s32 4294967294, %s796_s24   ;;  %s796_s24 = sphi %s843_s24, %s1017_s24   ;;  %s792_s23 = sphi %s841_s23, %s1016_s23   ;;  %s788_s22 = sphi %s839_s22, %s1015_s22   ;;  %s784_s21 = sphi %s837_s21, %s1014_s21  }
   0x6   : > { %s862_s27 = sadd.s32 1, %s796_s24   ;;  %s140_s28 = sadd.s32 1, %s792_s23 }
   0x7   : > { %s137_s29 = ssub.s32 %s796_s24, %s862_s27  ;;  %p150_p0 = scmp.ne.s32.totalorder %s792_s23, %s788_s22 }
   0x8   : > { %p138_p1 = scmp.eq.s32.totalorder %s137_s29, 0  ;;  %p151_p2 = scmp.eq.s32.totalorder %s858_s25, 1 }
   0x9   : > { %p156_p3 = scmp.ne.s32.totalorder %s788_s22, %s784_s21  ;;  %p157_p4 = scmp.eq.s32.totalorder %s587_s26, 1 }
   0xa   : > { %s873_s30 = scalar_select %p138_p1, %s792_s23, %s140_s28  }
   0xb   : > { %p875_p5 = por %p151_p2, %p150_p0  ;;  %p879_p6 = por %p157_p4, %p156_p3 }
   0xc   : > { %p590_p7 = scmp.ge.s32.totalorder %s796_s24, 1  ;;  %p220_p8 = scmp.lt.s32.totalorder %s796_s24, 3 }
   0xe   : > { %p221_p9 = pnand %p590_p7, %p220_p8 }
   0xf   : > { %v694_v0 = vld [vmem:[%s1006_s1] sm:$0xff] (!%p221_p9)   ;;  %v798_v1 = vmov (!%p221_p9), 0.0   ;;  %v695_v2 = vld [vmem:[%s1006_s1 + $0x8] sm:$0xff] (!%p221_p9)   ;;  %vm799_vm0 = vmmov (!%p221_p9), 0   ;;  %p254_p10 = scmp.lt.s32.totalorder (!%p221_p9), %s858_s25, 1  ;;  %vm284_vm1 = vcmask (!%p221_p9), 261120  }
  0x10   : > { %224 = sbr.rel (%p221_p9) target bundleno = 638 (0x27e), region = 40  ;;  %624 = vmatprep.subr.bf16.mxu0 (!%p221_p9), %v798_v1  ;;  %632 = vmatprep.subr.bf16.mxu1 (!%p221_p9), %v798_v1  ;;  %v696_v3 = vld [vmem:[%s1007_s2] sm:$0xff] (!%p221_p9)   ;;  %v697_v5 = vld [vmem:[%s1007_s2 + $0x10] sm:$0xff] (!%p221_p9)   ;;  %v698_v7 = vld [vmem:[%s1007_s2 + $0x8] sm:$0xff] (!%p221_p9)   ;;  %s918_s13 = sand.u32 (!%p221_p9), 1, %s788_s22   ;;  %vm455_vm2 = vcmask (!%p221_p9), 113664  }
  0x11   : > { %625 = vmatpush3.bf16.msra.mxu0 (!%p221_p9), %v694_v0  ;;  %628 = vmatprep.mubr.msk.bf16.mxu0 (!%p221_p9), %vm799_vm0, %v798_v1  ;;  %v699_v8 = vld [vmem:[%s1007_s2 + $0x18] sm:$0xff] (!%p221_p9)   ;;  %v594_v9 = vld [vmem:[%s1008_s3] ss:$0 sm:$0xff] (!%p221_p9)  ;;  %s591_s14 = sshll.u32 (!%p221_p9), %s918_s13, 3  ;;  %s611_s18 = sshll.u32 (!%p221_p9), %s858_s25, 7 }
  0x12   : > { %626 = vmatprep.subr.bf16.mxu0 (!%p221_p9), %v798_v1  ;;  %636 = vmatprep.mubr.msk.bf16.mxu1 (!%p221_p9), %vm799_vm0, %v798_v1  ;;  %v608_v22 = vld [vmem:[%s1009_s4] ss:$0 sm:$0xff] (!%p221_p9)  ;;  %s246_s17 = scalar_lea.vmem (!%p221_p9), [#allocation2], %s591_s14  ;;  %s934_s26 = scalar_lea.hbm (!%p221_p9), %s1010_s5, %s611_s18 }
  0x13   : > { %633 = vmatpush3.bf16.msra.mxu1 (!%p221_p9), %v696_v3  ;;  %s483_s28 = sshll.u32 (!%p221_p9), %s246_s17, 4  ;;  %s465_s29 = scalar_lea.sflag (!%p221_p9), [#allocation3], %s918_s13  ;;  %s484_s28 = int_to_ptr.vmem [resolvable:$true] %s483_s28 }
  0x14   : > { %634 = vmatprep.subr.bf16.mxu1 (!%p221_p9), %v798_v1  ;;  %s702_s9 = scalar_lea.vmem (!%p221_p9), %s484_s28, 128  ;;  %s800_s10 = smov (!%p221_p9), [#allocation2]  }
  0x15   : > { %627 = vmatpush3.bf16.msra.mxu0 (!%p221_p9), %v695_v2  ;;  %p703_p11 = scmp.ne.s32.totalorder (!%p221_p9), %s484_s28, %s702_s9  ;;  %s706_s11 = sshll.u32 (!%p221_p9), %s800_s10, 4  ;;  %s707_s11 = int_to_ptr.vmem [resolvable:$false] %s706_s11 }
  0x16   : > { %640 = vmatprep.subr.bf16.mxu0 (!%p221_p9), %v798_v1  ;;  %s708_s12 = scalar_lea.vmem (!%p221_p9), %s707_s11, 256  ;;  %p709_p0 = scmp.lt.s32.totalorder (!%p221_p9), %s484_s28, %s707_s11 }
  0x17   : > { %s255_s15 = scalar_select %p254_p10, %s858_s25, 1  ;;  %635 = vmatpush3.bf16.msra.mxu1 %v698_v7 }
  0x18   : > { %p704_p12 = pnand %p703_p11, %p875_p5  ;;  %p710_p1 = scmp.lt.s32.totalorder %s708_s12, %s702_s9 }
  0x19   : > { %s593_s16 = sshll.u32 %s255_s15, 3 }
  0x1a   : > { %s257_s19 = scalar_lea.vmem %s1005_s0, %s593_s16  ;;  %p705_p13 = pneg %p704_p12 }
  0x1b   : > { %v259_v4 = vld [vmem:[%s257_s19] sm:$0xff]  ;;  %p711_p2 = por %p710_p1, %p709_p0 }
  0x1c   : > { %v260_v6 = vpack.c.bf16 %v259_v4, %v259_v4 }
  0x1d   : > { %p712_p3 = pnand %p711_p2, %p705_p13 }
  0x1e   : > { %629 = vmatmul.mubr.msk.bf16.vlgmr.msra.gmra.mrb[0].mxu0 %vm284_vm1, %v260_v6  ;;  %637 = vmatmul.mubr.msk.bf16.vlgmr.msra.gmra.mrb[0].mxu1 %vm284_vm1, %v260_v6 }
  0x1f   : > { %641 = vmatpush3.bf16.msra.mxu0 %v697_v5  ;;  %644 = vmatprep.mubr.msk.bf16.mxu0 %vm799_vm0, %v798_v1 }
  0x20   : > { %642 = vmatprep.subr.bf16.mxu0 %v798_v1 }
  0x23   : > { %643 = vmatpush3.bf16.msra.mxu0 %v699_v8 }
  0xf1   : > { %v322_v10 = vpop.f32.mrb[0].mxu0  ;;  %v385_v17 = vpop.f32.mrb[0].mxu1 }
  0xf2   : > { %v323_v11 = vadd.f32 %v594_v9, %v322_v10  ;;  %v630_v12 = vpop.f32.mrb[1].mxu0  ;;  %v638_v18 = vpop.f32.mrb[1].mxu1 }
  0xf3   : > { %v325_v13 = vpop.f32.mrb[2].mxu0  ;;  %v388_v19 = vpop.f32.mrb[2].mxu1 }
  0xf4   : > { %v328_v14 = vmax.f32 %v323_v11, 0.0  ;;  %v631_v15 = vpop.f32.mrb[3].mxu0  ;;  %v639_v20 = vpop.f32.mrb[3].mxu1 }
  0xf6   : > { %v329_v16 = vpack.c.bf16 %v328_v14, %v328_v14 }
  0xf8   : > { %645 = vmatmul.mubr.msk.bf16.vlgmr.msra.gmra.mrb[4].mxu0 %vm284_vm1, %v329_v16 }
 0x1cb   : > { %v440_v21 = vpop.f32.mrb[4].mxu0 }
 0x1cc   : > { %v441_v23 = vadd.f32 %v440_v21, %v385_v17  ;;  %v646_v24 = vpop.f32.mrb[5].mxu0 }
 0x1cd   : > { %v443_v25 = vpop.f32.mrb[6].mxu0 }
 0x1ce   : > { %v453_v26 = vadd.f32 %v608_v22, %v441_v23  ;;  %v647_v27 = vpop.f32.mrb[7].mxu0 }
 0x1d0   : > { %v454_v28 = vmul.f32 %v453_v26, %v453_v26  ;;  %461 = vst.msk [vmem:[%s246_s17] sm:$0xff] %vm455_vm2, %v453_v26 }
 0x1d2   : > { %v456_v29 = vsel %vm455_vm2, %v454_v28, 0.0 }
 0x1d3   : > { %457 = vadd.xlane.f32.xlu0 %v456_v29 }
 0x1d4   : > { %715 = shalt.err (!%p712_p3)
}
 0x1d5   : > { %s716_s15 = scalar_lea.hbm %s934_s26, 128  ;;  %s720_s19 = scalar_lea.hbm %s1010_s5, 256 }
 0x1d6   : > { %p717_p4 = scmp.ne.s32.totalorder %s934_s26, %s716_s15  ;;  %p721_p9 = scmp.lt.u32.totalorder %s934_s26, %s1010_s5 }
 0x1d7   : > { %p722_p10 = scmp.lt.u32.totalorder %s720_s19, %s716_s15  ;;  %p724_p12 = scmp.lt.u32.totalorder %s716_s15, %s934_s26 }
 0x1d8   : > { %p718_p7 = pnand %p717_p4, %p875_p5 }
 0x1d9   : > { %p723_p11 = por %p722_p10, %p721_p9 }
 0x1da   : > { %p719_p8 = pneg %p718_p7 }
 0x1db   : > { %p725_p13 = por %p724_p12, %p723_p11 }
 0x1dd   : > { %p726_p0 = pnand %p725_p13, %p719_p8 }
 0x1df   : > { %729 = shalt.err (!%p726_p0)
}
 0x1e0   : > { %648 = dma.vmem_to_hbm [thread:$0]  (%p875_p5), %s484_s28, 128, %s934_s26, %s465_s29  }
 0x1e1   : > { %s253_s9 = scalar_lea.vmem [#allocation4], %s591_s14  ;;  %s961_s16 = scalar_lea.hbm %s1011_s6, %s611_s18 }
 0x1e2   : > { %s496_s11 = sshll.u32 %s253_s9, 4  ;;  %s470_s26 = scalar_lea.sflag [#allocation5], %s918_s13  ;;  %s963_s11 = int_to_ptr.vmem [resolvable:$true] %s496_s11 }
 0x1e3   : > { %s730_s28 = scalar_lea.vmem %s963_s11, 128  ;;  %s801_s14 = smov [#allocation4]  }
 0x1e4   : > { %p731_p1 = scmp.ne.s32.totalorder %s963_s11, %s730_s28  ;;  %s734_s25 = sshll.u32 %s801_s14, 4  ;;  %s735_s25 = int_to_ptr.vmem [resolvable:$false] %s734_s25 }
 0x1e5   : > { %s736_s29 = scalar_lea.vmem %s735_s25, 256  ;;  %p737_p4 = scmp.lt.s32.totalorder %s963_s11, %s735_s25 }
 0x1e6   : > { %p732_p2 = pnand %p731_p1, %p875_p5  ;;  %p738_p7 = scmp.lt.s32.totalorder %s736_s29, %s730_s28 }
 0x1e8   : > { %p733_p3 = pneg %p732_p2  ;;  %p739_p8 = por %p738_p7, %p737_p4 }
 0x1ea   : > { %p740_p9 = pnand %p739_p8, %p733_p3 }
 0x260   : > { %v458_v30 = vpop.xlane.xlu0 %457 }
 0x261   : > { %v459_v31 = vmax.f32 %v458_v30, 1e-08 }
 0x263   : > { %700 = vrsqrt.f32 %v459_v31 }
 0x26d   : > { %v701_v32 = vpop.eup %700 }
 0x26e   : > { %v462_v33 = vmul.f32 %v701_v32, %v453_v26 }
 0x270   : > { %463 = vst.msk [vmem:[%s253_s9] sm:$0xff] %vm455_vm2, %v462_v33 }
 0x271   : > { %743 = shalt.err (!%p740_p9)
}
 0x272   : > { %s744_s13 = scalar_lea.hbm %s961_s16, 128  ;;  %s748_s19 = scalar_lea.hbm %s1011_s6, 256 }
 0x273   : > { %p745_p10 = scmp.ne.s32.totalorder %s961_s16, %s744_s13  ;;  %p749_p13 = scmp.lt.u32.totalorder %s961_s16, %s1011_s6 }
 0x274   : > { %p750_p0 = scmp.lt.u32.totalorder %s748_s19, %s744_s13  ;;  %p752_p2 = scmp.lt.u32.totalorder %s744_s13, %s961_s16 }
 0x275   : > { %p746_p11 = pnand %p745_p10, %p875_p5 }
 0x276   : > { %p751_p1 = por %p750_p0, %p749_p13 }
 0x277   : > { %p747_p12 = pneg %p746_p11 }
 0x278   : > { %p753_p3 = por %p752_p2, %p751_p1 }
 0x27a   : > { %p754_p4 = pnand %p753_p3, %p747_p12 }
 0x27c   : > { %757 = shalt.err (!%p754_p4)
}
 0x27d   : > { %649 = dma.vmem_to_hbm [thread:$0]  (%p875_p5), %s963_s11, 128, %s961_s16, %s470_s26  }
 0x27e PF: > { %p659_p7 = scmp.ge.s32.totalorder %s796_s24, 2  ;;  %s508_s9 = sand.u32 1, %s784_s21  }
 0x27f   : > { %s509_s12 = scalar_lea.sflag [#allocation3], %s508_s9 }
 0x280   : > { %p653_p8 = pnand %p659_p7, %p879_p6 }
 0x282   : > { %775 = dma.done.wait (!%p653_p8), %s509_s12, 128  }
 0x283   : > { %777 = vsyncadd (!%p653_p8), %s509_s12, 4294967168  ;;  %s518_s15 = scalar_lea.sflag [#allocation5], %s508_s9 }
 0x284   : > { %779 = dma.done.wait (!%p653_p8), %s518_s15, 128  }
 0x285   : > { %781 = vsyncadd (!%p653_p8), %s518_s15, 4294967168  ;;  %p20_p5 = scmp.ge.s32.totalorder %s862_s27, 4   ;;  %s1014_s21 = smov %s788_s22 }
 0x286   : > { %s1015_s22 = smov %s792_s23  ;;  %s1016_s23 = smov %s873_s30 }
 0x287   : > { %s1017_s24 = smov %s862_s27  ;;  %22 = sbr.rel (!%p20_p5) target bundleno = 5 (0x5), region = 93 }
 0x28e   :  { %523 = vsyncpa [#allocation3], 1 }
 0x28f   :  { %525 = vsyncpa [#allocation3 + $0x1], 1 }
 0x290   :  { %526 = vsyncpa [#allocation5], 1 }
 0x291   :  { %528 = vsyncpa [#allocation5 + $0x1], 1 }

</bundles_post_ra>
